<compile_context>
chip_gen: v5e
topology: v5e:2x2
jax: 0.10.0
libtpu: 0.0.40
codegen_flags: <defaults>
</compile_context>

<pallas_src>
import functools

import jax
import jax.numpy as jnp
from jax.experimental import pallas as pl
from jax.experimental.pallas import tpu as pltpu

# ---- deterministic "parameters" of the module (from __init__) --------------
EPS = 1e-5
ALPHA1 = 0.3   # self.weight1  (default 0 in the module; nonzero here so the
ALPHA2 = 0.2   # self.weight2   style-mixing path is actually exercised)

# Per-step VMEM budget for the 4 double-buffered streams (3 in + 1 out) and
# explicit scoped limit handed to Mosaic.  Safe on v5e/v6e (128 MiB physical
# VMEM) and v7x (64 MiB physical).
_VMEM_STREAM_BUDGET = 16 << 20    # bytes
_VMEM_LIMIT_BYTES = 40 << 20      # bytes


def _round_up(x, m):
    return (x + m - 1) // m * m


def _choose_row_tile(rows, n, itemsize):
    """Largest row tile (multiple of 8) fitting the double-buffered budget."""
    # Per grid step: 4 streams x 2 pipeline buffers x tr x n x itemsize bytes.
    tr_budget = (_VMEM_STREAM_BUDGET // (8 * n * itemsize)) // 8 * 8
    tr_budget = max(8, min(tr_budget, 1024))
    # TODO(synk): if even tr=8 exceeds the budget (huge H*W, e.g. 512x512 on
    # v7x), switch to a two-pass spatial-axis reduction instead of whole rows.
    rows8 = _round_up(rows, 8)
    tr = min(tr_budget, rows8)
    # Keep >= 2 grid steps when there is enough work (pipelining / megacore).
    if rows8 >= 16 and tr >= rows8:
        tr = max(8, (rows8 // 2) // 8 * 8)
    return tr


def _adain_kernel(x_ref, sin_ref, sout_ref, o_ref, *, eps, alpha1, alpha2):
    """One block of rows: reduce over the spatial (last) axis, mix stats."""
    n = x_ref.shape[-1]
    inv_n = 1.0 / n
    inv_nm1 = 1.0 / max(n - 1, 1)  # torch .var() is unbiased (divide by N-1)

    x = x_ref[...].astype(jnp.float32)
    s_in = sin_ref[...].astype(jnp.float32)
    s_out = sout_ref[...].astype(jnp.float32)

    def moments(v):
        # Single pass: sum and sum-of-squares, then var = (ss - n*m^2)/(n-1).
        s = jnp.sum(v, axis=-1, keepdims=True)
        ss = jnp.sum(v * v, axis=-1, keepdims=True)
        m = s * inv_n
        var_eps = (ss - s * m) * inv_nm1 + eps
        return m, var_eps

    x_mean, x_vareps = moments(x)
    in_mean, in_vareps = moments(s_in)
    out_mean, out_vareps = moments(s_out)

    # rsqrt/sqrt lower to the EUP (its own VLIW slot); std recovered per-row.
    inv_x_std = jax.lax.rsqrt(x_vareps)
    x_std = x_vareps * inv_x_std
    in_std = jnp.sqrt(in_vareps)
    out_std = jnp.sqrt(out_vareps)

    w0 = 1.0 - alpha1 - alpha2
    mix_std = w0 * x_std + alpha1 * in_std + alpha2 * out_std
    mix_mean = w0 * x_mean + alpha1 * in_mean + alpha2 * out_mean

    # Fold (x - x_mean)/x_std * mix_std + mix_mean into x*scale + bias,
    # with scale/bias computed once per row (shape (tr, 1)).
    scale = mix_std * inv_x_std
    bias = mix_mean - x_mean * scale
    o_ref[...] = (x * scale + bias).astype(o_ref.dtype)


def adain2d(x, in_style, out_style, *, eps=EPS, alpha1=ALPHA1, alpha2=ALPHA2):
    """Pallas implementation of Adain2d.forward.

    x, in_style, out_style: (B, C, H, W), same shape/dtype.
    Returns tensor of same shape/dtype as x.
    """
    b, c, h, w = x.shape
    rows = b * c
    n = h * w
    # TODO(synk): for feature maps with H*W < 128 (e.g. 7x7), the output tile
    # is not lane-dense (masked partial stores); a packed layout would help
    # but needs masked per-row reductions.

    x2 = x.reshape(rows, n)
    i2 = in_style.reshape(rows, n)
    o2 = out_style.reshape(rows, n)

    itemsize = jnp.dtype(x.dtype).itemsize
    tr = _choose_row_tile(rows, n, itemsize)
    grid = (pl.cdiv(rows, tr),)

    kernel = functools.partial(
        _adain_kernel, eps=eps, alpha1=alpha1, alpha2=alpha2
    )

    row_spec = pl.BlockSpec((tr, n), lambda i: (i, 0))
    cost = pl.CostEstimate(
        flops=10 * rows * n,
        transcendentals=4 * rows,
        bytes_accessed=4 * rows * n * itemsize,
    )

    out = pl.pallas_call(
        kernel,
        out_shape=jax.ShapeDtypeStruct((rows, n), x.dtype),
        grid=grid,
        in_specs=[row_spec, row_spec, row_spec],
        out_specs=row_spec,
        compiler_params=pltpu.CompilerParams(
            dimension_semantics=("parallel",),
            vmem_limit_bytes=_VMEM_LIMIT_BYTES,
        ),
        cost_estimate=cost,
    )(x2, i2, o2)

    return out.reshape(b, c, h, w)


def _adain2d_ref(x, in_style, out_style, *, eps=EPS, alpha1=ALPHA1, alpha2=ALPHA2):
    """Pure-JAX reference mirroring the PyTorch forward."""
    b, c, h, w = x.shape

    def stats(v):
        v = v.reshape(b, c, -1).astype(jnp.float32)
        m = v.mean(axis=2)
        var = v.var(axis=2, ddof=1) + eps  # unbiased, like torch.var
        return m.reshape(b, c, 1, 1), jnp.sqrt(var).reshape(b, c, 1, 1)

    x_mean, x_std = stats(x)
    in_mean, in_std = stats(in_style)
    out_mean, out_std = stats(out_style)

    w0 = 1.0 - alpha1 - alpha2
    mix_std = w0 * x_std + alpha1 * in_std + alpha2 * out_std
    mix_mean = w0 * x_mean + alpha1 * in_mean + alpha2 * out_mean

    norm = (x.astype(jnp.float32) - x_mean) / x_std
    return (norm * mix_std + mix_mean).astype(x.dtype)


if __name__ == "__main__":
    key = jax.random.PRNGKey(0)
    k1, k2, k3 = jax.random.split(key, 3)

    B, C, H, W = 2, 4, 16, 16
    x = jax.random.normal(k1, (B, C, H, W), dtype=jnp.float32)
    in_style = jax.random.normal(k2, (B, C, H, W), dtype=jnp.float32) * 2.0 + 0.5
    out_style = jax.random.normal(k3, (B, C, H, W), dtype=jnp.float32) * 0.7 - 1.0

    y = adain2d(x, in_style, out_style)
    y = jax.block_until_ready(y)

    y_ref = _adain2d_ref(x, in_style, out_style)
    assert y.shape == x.shape and y.dtype == x.dtype
    assert jnp.allclose(y, y_ref, atol=1e-4, rtol=1e-4)

    # Also exercise a row count that is not a multiple of the tile (ragged
    # last grid block, masked writeback) and a larger instance count
    # (multi-step grid) at small spatial size.
    for (B2, C2, H2, W2) in [(3, 5, 8, 16), (4, 24, 16, 16)]:
        kk = jax.random.split(jax.random.PRNGKey(B2 * 100 + C2), 3)
        xa = jax.random.normal(kk[0], (B2, C2, H2, W2), dtype=jnp.float32)
        ia = jax.random.normal(kk[1], (B2, C2, H2, W2), dtype=jnp.float32) * 1.5
        oa = jax.random.normal(kk[2], (B2, C2, H2, W2), dtype=jnp.float32) - 0.3
        ya = jax.block_until_ready(adain2d(xa, ia, oa))
        ra = _adain2d_ref(xa, ia, oa)
        assert jnp.allclose(ya, ra, atol=1e-4, rtol=1e-4)

    print("KERNEL_OK")
</pallas_src>

<mosaic_0001>
module attributes {stable_mosaic.version = 11 : i64} {
  func.func @_adain_kernel(%arg0: i32, %arg1: memref<8x256xf32, #tpu.memory_space<vmem>>, %arg2: memref<8x256xf32, #tpu.memory_space<vmem>>, %arg3: memref<8x256xf32, #tpu.memory_space<vmem>>, %arg4: memref<8x256xf32, #tpu.memory_space<vmem>>) attributes {dimension_semantics = [#tpu.dimension_semantics<parallel>], iteration_bounds = array<i64: 1>, scalar_prefetch = 0 : i64, scratch_operands = 0 : i64, tpu.core_type = #tpu.core_type<tc>, window_params = [{transform_indices = @transform_0, window_bounds = array<i64: 8, 256>}, {transform_indices = @transform_1, window_bounds = array<i64: 8, 256>}, {transform_indices = @transform_2, window_bounds = array<i64: 8, 256>}, {transform_indices = @transform_3, window_bounds = array<i64: 8, 256>}]} {
    %c0 = arith.constant 0 : index
    %c0_0 = arith.constant 0 : index
    %0 = vector.load %arg1[%c0, %c0_0] : memref<8x256xf32, #tpu.memory_space<vmem>>, vector<8x256xf32>
    %c0_1 = arith.constant 0 : index
    %c0_2 = arith.constant 0 : index
    %1 = vector.load %arg2[%c0_1, %c0_2] : memref<8x256xf32, #tpu.memory_space<vmem>>, vector<8x256xf32>
    %c0_3 = arith.constant 0 : index
    %c0_4 = arith.constant 0 : index
    %2 = vector.load %arg3[%c0_3, %c0_4] : memref<8x256xf32, #tpu.memory_space<vmem>>, vector<8x256xf32>
    %cst = arith.constant dense<0.000000e+00> : vector<8xf32>
    %3 = vector.multi_reduction <add>, %0, %cst [1] : vector<8x256xf32> to vector<8xf32>
    %4 = vector.shape_cast %3 : vector<8xf32> to vector<8x1xf32>
    %5 = arith.mulf %0, %0 : vector<8x256xf32>
    %cst_5 = arith.constant dense<0.000000e+00> : vector<8xf32>
    %6 = vector.multi_reduction <add>, %5, %cst_5 [1] : vector<8x256xf32> to vector<8xf32>
    %7 = vector.shape_cast %6 : vector<8xf32> to vector<8x1xf32>
    %cst_6 = arith.constant 3.906250e-03 : f32
    %8 = vector.broadcast %cst_6 : f32 to vector<8x1xf32>
    %9 = arith.mulf %4, %8 : vector<8x1xf32>
    %10 = arith.mulf %4, %9 : vector<8x1xf32>
    %11 = arith.subf %7, %10 : vector<8x1xf32>
    %cst_7 = arith.constant 0.00392156886 : f32
    %12 = vector.broadcast %cst_7 : f32 to vector<8x1xf32>
    %13 = arith.mulf %11, %12 : vector<8x1xf32>
    %cst_8 = arith.constant 9.99999974E-6 : f32
    %14 = vector.broadcast %cst_8 : f32 to vector<8x1xf32>
    %15 = arith.addf %13, %14 : vector<8x1xf32>
    %cst_9 = arith.constant dense<0.000000e+00> : vector<8xf32>
    %16 = vector.multi_reduction <add>, %1, %cst_9 [1] : vector<8x256xf32> to vector<8xf32>
    %17 = vector.shape_cast %16 : vector<8xf32> to vector<8x1xf32>
    %18 = arith.mulf %1, %1 : vector<8x256xf32>
    %cst_10 = arith.constant dense<0.000000e+00> : vector<8xf32>
    %19 = vector.multi_reduction <add>, %18, %cst_10 [1] : vector<8x256xf32> to vector<8xf32>
    %20 = vector.shape_cast %19 : vector<8xf32> to vector<8x1xf32>
    %cst_11 = arith.constant 3.906250e-03 : f32
    %21 = vector.broadcast %cst_11 : f32 to vector<8x1xf32>
    %22 = arith.mulf %17, %21 : vector<8x1xf32>
    %23 = arith.mulf %17, %22 : vector<8x1xf32>
    %24 = arith.subf %20, %23 : vector<8x1xf32>
    %cst_12 = arith.constant 0.00392156886 : f32
    %25 = vector.broadcast %cst_12 : f32 to vector<8x1xf32>
    %26 = arith.mulf %24, %25 : vector<8x1xf32>
    %cst_13 = arith.constant 9.99999974E-6 : f32
    %27 = vector.broadcast %cst_13 : f32 to vector<8x1xf32>
    %28 = arith.addf %26, %27 : vector<8x1xf32>
    %cst_14 = arith.constant dense<0.000000e+00> : vector<8xf32>
    %29 = vector.multi_reduction <add>, %2, %cst_14 [1] : vector<8x256xf32> to vector<8xf32>
    %30 = vector.shape_cast %29 : vector<8xf32> to vector<8x1xf32>
    %31 = arith.mulf %2, %2 : vector<8x256xf32>
    %cst_15 = arith.constant dense<0.000000e+00> : vector<8xf32>
    %32 = vector.multi_reduction <add>, %31, %cst_15 [1] : vector<8x256xf32> to vector<8xf32>
    %33 = vector.shape_cast %32 : vector<8xf32> to vector<8x1xf32>
    %cst_16 = arith.constant 3.906250e-03 : f32
    %34 = vector.broadcast %cst_16 : f32 to vector<8x1xf32>
    %35 = arith.mulf %30, %34 : vector<8x1xf32>
    %36 = arith.mulf %30, %35 : vector<8x1xf32>
    %37 = arith.subf %33, %36 : vector<8x1xf32>
    %cst_17 = arith.constant 0.00392156886 : f32
    %38 = vector.broadcast %cst_17 : f32 to vector<8x1xf32>
    %39 = arith.mulf %37, %38 : vector<8x1xf32>
    %cst_18 = arith.constant 9.99999974E-6 : f32
    %40 = vector.broadcast %cst_18 : f32 to vector<8x1xf32>
    %41 = arith.addf %39, %40 : vector<8x1xf32>
    %42 = math.rsqrt %15 : vector<8x1xf32>
    %43 = arith.mulf %15, %42 : vector<8x1xf32>
    %44 = math.sqrt %28 : vector<8x1xf32>
    %45 = math.sqrt %41 : vector<8x1xf32>
    %cst_19 = arith.constant 5.000000e-01 : f32
    %46 = vector.broadcast %cst_19 : f32 to vector<8x1xf32>
    %47 = arith.mulf %46, %43 : vector<8x1xf32>
    %cst_20 = arith.constant 3.000000e-01 : f32
    %48 = vector.broadcast %cst_20 : f32 to vector<8x1xf32>
    %49 = arith.mulf %48, %44 : vector<8x1xf32>
    %50 = arith.addf %47, %49 : vector<8x1xf32>
    %cst_21 = arith.constant 2.000000e-01 : f32
    %51 = vector.broadcast %cst_21 : f32 to vector<8x1xf32>
    %52 = arith.mulf %51, %45 : vector<8x1xf32>
    %53 = arith.addf %50, %52 : vector<8x1xf32>
    %cst_22 = arith.constant 5.000000e-01 : f32
    %54 = vector.broadcast %cst_22 : f32 to vector<8x1xf32>
    %55 = arith.mulf %54, %9 : vector<8x1xf32>
    %cst_23 = arith.constant 3.000000e-01 : f32
    %56 = vector.broadcast %cst_23 : f32 to vector<8x1xf32>
    %57 = arith.mulf %56, %22 : vector<8x1xf32>
    %58 = arith.addf %55, %57 : vector<8x1xf32>
    %cst_24 = arith.constant 2.000000e-01 : f32
    %59 = vector.broadcast %cst_24 : f32 to vector<8x1xf32>
    %60 = arith.mulf %59, %35 : vector<8x1xf32>
    %61 = arith.addf %58, %60 : vector<8x1xf32>
    %62 = arith.mulf %53, %42 : vector<8x1xf32>
    %63 = arith.mulf %9, %62 : vector<8x1xf32>
    %64 = arith.subf %61, %63 : vector<8x1xf32>
    %65 = vector.broadcast %62 : vector<8x1xf32> to vector<8x256xf32>
    %66 = arith.mulf %0, %65 : vector<8x256xf32>
    %67 = vector.broadcast %64 : vector<8x1xf32> to vector<8x256xf32>
    %68 = arith.addf %66, %67 : vector<8x256xf32>
    %c0_25 = arith.constant 0 : index
    %c0_26 = arith.constant 0 : index
    %69 = vector.load %arg4[%c0_25, %c0_26] : memref<8x256xf32, #tpu.memory_space<vmem>>, vector<8x256xf32>
    tpu.vector_store %arg4[%c0_25, %c0_26], %68 {strides = array<i32>} : memref<8x256xf32, #tpu.memory_space<vmem>>, vector<8x256xf32>,
    return
  }
  func.func @transform_0(%arg0: i32) -> (i32, i32) {
    %c0_i32 = arith.constant 0 : i32
    %c0_i32_0 = arith.constant 0 : i32
    return %arg0, %c0_i32 : i32, i32
  }
  func.func @transform_1(%arg0: i32) -> (i32, i32) {
    %c0_i32 = arith.constant 0 : i32
    %c0_i32_0 = arith.constant 0 : i32
    return %arg0, %c0_i32 : i32, i32
  }
  func.func @transform_2(%arg0: i32) -> (i32, i32) {
    %c0_i32 = arith.constant 0 : i32
    %c0_i32_0 = arith.constant 0 : i32
    return %arg0, %c0_i32 : i32, i32
  }
  func.func @transform_3(%arg0: i32) -> (i32, i32) {
    %c0_i32 = arith.constant 0 : i32
    %c0_i32_0 = arith.constant 0 : i32
    return %arg0, %c0_i32 : i32, i32
  }
}

</mosaic_0001>

<bundles_post_ra>
// kernel: tpu_custom_call.1
= control target key start
LH: loop header
LB: loop body
LE: loop exit
PB: predicated region body
PF: predicated region fallthrough
CT: control target
= control target key end

     0   :  { %8 = vsyncpa [#allocation3], 0  ;;  %s337_s0 = inlined_call_operand.hbm [shape: f32[8,256], index: 0, kind: input, shape index: {}]   ;;  %s338_s1 = inlined_call_operand.hbm [shape: f32[8,256], index: 1, kind: input, shape index: {}]   ;;  %s339_s2 = inlined_call_operand.hbm [shape: f32[8,256], index: 2, kind: input, shape index: {}]   ;;  %s340_s3 = inlined_call_operand.hbm [shape: f32[8,256], index: 3, kind: output, shape index: {}]  }
   0x1   :  { %9 = vsyncpa [#allocation6], 0  ;;  %s27_s14 = sshll.u32 %s338_s1, 4  ;;  %s28_s14 = int_to_ptr.hbm [resolvable:$true] %s27_s14 }
   0x2   :  { %10 = vsyncpa [#allocation4], 0  ;;  %s285_s15 = smov [#allocation5]   ;;  %s16_s19 = sshll.u32 %s337_s0, 4  ;;  %s17_s19 = int_to_ptr.hbm [resolvable:$true] %s16_s19 }
   0x3   :  { %s29_s16 = sshll.u32 %s285_s15, 4  ;;  %s286_s20 = smov [#allocation2]   ;;  %s30_s16 = int_to_ptr.vmem [resolvable:$true] %s29_s16 }
   0x4   :  { %32 = dma.hbm_to_vmem [thread:$0]  %s28_s14, 256, %s30_s16, [#allocation6]  }
   0x5   :  { %s18_s21 = sshll.u32 %s286_s20, 4  ;;  %s38_s24 = sshll.u32 %s339_s2, 4  ;;  %s19_s21 = int_to_ptr.vmem [resolvable:$true] %s18_s21  ;;  %s39_s24 = int_to_ptr.hbm [resolvable:$true] %s38_s24 }
   0x6   :  { %21 = dma.hbm_to_vmem [thread:$0]  %s17_s19, 256, %s19_s21, [#allocation3]  }
   0x7   :  { %s287_s1 = smov [#allocation7]  }
   0x8   :  { %s40_s25 = sshll.u32 %s287_s1, 4  ;;  %s41_s25 = int_to_ptr.vmem [resolvable:$true] %s40_s25 }
   0x9   :  { %43 = dma.hbm_to_vmem [thread:$0]  %s39_s24, 256, %s41_s25, [#allocation6]  }
   0xa   :  { %279 = dma.done.wait [#allocation3], 256  }
   0xb   :  { %280 = vsyncadd [#allocation3], 4294967040 }
   0xc   :  { %281 = dma.done.wait [#allocation6], 512  }
   0xd   :  { %282 = vsyncadd [#allocation6], 4294966784  ;;  %v60_v0 = vld [vmem:[#allocation7] sm:$0xff]  ;;  %v61_v1 = vld [vmem:[#allocation7 + $0x8] sm:$0xff]  ;;  %s288_s0 = smov [#allocation8]   ;;  %s162_s28 = sshll.u32 %s340_s3, 4  ;;  %s163_s28 = int_to_ptr.hbm [resolvable:$true] %s162_s28 }
   0xe   :  { %v58_v2 = vld [vmem:[#allocation5] sm:$0xff]  ;;  %v88_v3 = vadd.f32 %v61_v1, %v60_v0  ;;  %v59_v4 = vld [vmem:[#allocation5 + $0x8] sm:$0xff]  ;;  %v318_v5 = vld [vmem:[#allocation2] sm:$0xff]  ;;  %v91_v13 = vmul.f32 %v60_v0, %v60_v0  ;;  %v92_v14 = vmul.f32 %v61_v1, %v61_v1  ;;  %s160_s2 = sshll.u32 %s288_s0, 4  ;;  %s161_s2 = int_to_ptr.vmem [resolvable:$true] %s160_s2 }
   0xf   :  { %v320_v6 = vld [vmem:[#allocation2 + $0x8] sm:$0xff]  ;;  %v75_v7 = vadd.f32 %v59_v4, %v58_v2  ;;  %v65_v8 = vmul.f32 %v318_v5, %v318_v5  ;;  %v78_v10 = vmul.f32 %v58_v2, %v58_v2  ;;  %v79_v11 = vmul.f32 %v59_v4, %v59_v4 }
  0x10   :  { %v66_v9 = vmul.f32 %v320_v6, %v320_v6  ;;  %89 = vadd.xlane.f32.xlu1 %v88_v3  ;;  %v62_v16 = vadd.f32 %v320_v6, %v318_v5  ;;  %v93_v17 = vadd.f32 %v92_v14, %v91_v13 }
  0x11   :  { %76 = vadd.xlane.f32.xlu0 %v75_v7  ;;  %v80_v15 = vadd.f32 %v79_v11, %v78_v10 }
  0x12   :  { %v67_v12 = vadd.f32 %v66_v9, %v65_v8 }
  0x14   :  { %68 = vadd.xlane.f32.xlu2 %v67_v12 }
  0x18   :  { %81 = vadd.xlane.f32.xlu1 %v80_v15 }
  0x19   :  { %63 = vadd.xlane.f32.xlu0 %v62_v16 }
  0x1c   :  { %94 = vadd.xlane.f32.xlu2 %v93_v17 }
  0x83   :  { %v90_v18 = vpop.xlane.xlu1 %89 }
  0x84   :  { %v77_v19 = vpop.xlane.xlu0 %76  ;;  %v328_v22 = vmul.f32 0.00390625, %v90_v18 }
  0x85   :  { %v83_v20 = vmul.f32 0.00390625, %v77_v19 }
  0x86   :  { %v97_v27 = vmul.f32 %v328_v22, %v90_v18  ;;  %v144_v13 = vmul.f32 0.2, %v328_v22 }
  0x87   :  { %v69_v21 = vpop.xlane.xlu2 %68  ;;  %v84_v23 = vmul.f32 %v83_v20, %v77_v19  ;;  %v142_v8 = vmul.f32 0.3, %v83_v20 }
  0x8b   :  { %v82_v24 = vpop.xlane.xlu1 %81 }
  0x8c   :  { %v85_v25 = vsub.f32 %v82_v24, %v84_v23  ;;  %v64_v26 = vpop.xlane.xlu0 %63 }
  0x8d   :  { %v70_v28 = vmul.f32 0.00390625, %v64_v26 }
  0x8e   :  { %v86_v29 = vmul.f32 0.003921569, %v85_v25 }
  0x8f   :  { %v95_v30 = vpop.xlane.xlu2 %94  ;;  %v71_v31 = vmul.f32 %v70_v28, %v64_v26  ;;  %v141_v7 = vmul.f32 0.5, %v70_v28 }
  0x90   :  { %v98_v32 = vsub.f32 %v95_v30, %v97_v27  ;;  %v87_v33 = vadd.f32 1e-05, %v86_v29 }
  0x91   :  { %v72_v34 = vsub.f32 %v69_v21, %v71_v31  ;;  %v143_v11 = vadd.f32 %v142_v8, %v141_v7 }
  0x92   :  { %v99_v35 = vmul.f32 0.003921569, %v98_v32  ;;  %177 = vrsqrt.f32 %v87_v33  ;;  %vm119_vm0 = vcmp.eq.f32.partialorder %v87_v33, inf  ;;  %v122_v58 = vand.u32 2147483648, %v87_v33 }
  0x93   :  { %v73_v36 = vmul.f32 0.003921569, %v72_v34  ;;  %vm121_vm3 = vcmp.eq.f32.partialorder %v87_v33, 0.0  ;;  %v145_v15 = vadd.f32 %v144_v13, %v143_v11 }
  0x94   :  { %v100_v37 = vadd.f32 1e-05, %v99_v35 }
  0x95   :  { %v74_v38 = vadd.f32 1e-05, %v73_v36 }
  0x96   :  { %179 = vrsqrt.f32 %v100_v37  ;;  %vm131_vm5 = vcmp.eq.f32.partialorder %v100_v37, inf  ;;  %v134_v0 = vand.u32 2147483648, %v100_v37  ;;  %vm133_vm6 = vcmp.eq.f32.partialorder %v100_v37, 0.0 }
  0x97   :  { %181 = vrsqrt.f32 %v74_v38  ;;  %vm107_vm2 = vweird.f32 %v74_v38 }
  0x98   :  { %v178_v39 = vpop.eup %177 }
  0x99   :  { %v113_v40 = vmul.f32 %v178_v39, %v87_v33 }
  0x9b   :  { %v114_v42 = vmul.f32 %v178_v39, %v113_v40 }
  0x9c   :  { %v180_v41 = vpop.eup %179 }
  0x9d   :  { %v125_v43 = vmul.f32 %v180_v41, %v100_v37  ;;  %v182_v44 = vpop.eup %181  ;;  %v115_v45 = vmul.f32 0.5, %v114_v42 }
  0x9e   :  { %v102_v46 = vmul.f32 %v182_v44, %v74_v38  ;;  %vm108_vm1 = vweird.f32 %v182_v44 }
  0x9f   :  { %v126_v47 = vmul.f32 %v180_v41, %v125_v43  ;;  %v116_v48 = vsub.f32 1.5, %v115_v45  ;;  %vm109_vm4 = vmor %vm107_vm2, %vm108_vm1 }
  0xa0   :  { %v103_v49 = vmul.f32 %v182_v44, %v102_v46 }
  0xa1   :  { %v127_v50 = vmul.f32 0.5, %v126_v47  ;;  %v117_v51 = vmul.f32 %v178_v39, %v116_v48 }
  0xa2   :  { %v104_v52 = vmul.f32 0.5, %v103_v49 }
  0xa3   :  { %v128_v53 = vsub.f32 1.5, %v127_v50  ;;  %v118_v54 = vmul.f32 %v117_v51, %v87_v33 }
  0xa4   :  { %v105_v55 = vsub.f32 1.5, %v104_v52 }
  0xa5   :  { %v129_v56 = vmul.f32 %v180_v41, %v128_v53  ;;  %v120_v57 = vsel %vm119_vm0, %v87_v33, %v118_v54 }
  0xa6   :  { %v106_v59 = vmul.f32 %v182_v44, %v105_v55  ;;  %v123_v61 = vsel %vm121_vm3, %v122_v58, %v120_v57 }
  0xa7   :  { %v130_v60 = vmul.f32 %v129_v56, %v100_v37  ;;  %v137_v3 = vmul.f32 0.3, %v123_v61 }
  0xa8   :  { %v110_v62 = vsel %vm109_vm4, %v182_v44, %v106_v59 }
  0xa9   :  { %v132_v63 = vsel %vm131_vm5, %v100_v37, %v130_v60  ;;  %v111_v1 = vmul.f32 %v110_v62, %v74_v38 }
  0xaa   :  { %v135_v2 = vsel %vm133_vm6, %v134_v0, %v132_v63 }
  0xab   :  { %v136_v4 = vmul.f32 0.5, %v111_v1  ;;  %v139_v10 = vmul.f32 0.2, %v135_v2 }
  0xad   :  { %v138_v9 = vadd.f32 %v137_v3, %v136_v4 }
  0xaf   :  { %v140_v12 = vadd.f32 %v139_v10, %v138_v9 }
  0xb1   :  { %v146_v14 = vmul.f32 %v140_v12, %v110_v62 }
  0xb3   :  { %v147_v16 = vmul.f32 %v146_v14, %v70_v28  ;;  %v149_v18 = vmul.f32 %v146_v14, %v318_v5  ;;  %v150_v19 = vmul.f32 %v146_v14, %v320_v6 }
  0xb5   :  { %v148_v17 = vsub.f32 %v145_v15, %v147_v16 }
  0xb7   :  { %v151_v20 = vadd.f32 %v149_v18, %v148_v17  ;;  %v152_v21 = vadd.f32 %v150_v19, %v148_v17 }
  0xb9   :  { %153 = vst [vmem:[#allocation8] sm:$0xff] %v151_v20 }
  0xba   :  { %154 = vst [vmem:[#allocation8 + $0x8] sm:$0xff] %v152_v21 }
  0xbb   :  { %165 = dma.vmem_to_hbm [thread:$0]  %s161_s2, 256, %s163_s28, [#allocation4]  }
  0xbc   :  { %283 = dma.done.wait [#allocation4], 256  }
  0xbd   :  { %284 = vsyncadd [#allocation4], 4294967040 }
  0xbe   :  { %170 = vsyncpa [#allocation3], 1 }
  0xbf   :  { %171 = vsyncpa [#allocation6], 1 }
  0xc0   :  { %172 = vsyncpa [#allocation4], 1 }

</bundles_post_ra>
